<compile_context>
chip_gen: v5e
topology: v5e:2x2
jax: 0.10.0
libtpu: 0.0.40
codegen_flags: <defaults>
</compile_context>

<pallas_src>
import functools
import math

import jax
import jax.numpy as jnp
from jax.experimental import pallas as pl
from jax.experimental.pallas import tpu as pltpu


def _cdiv(a, b):
    return (a + b - 1) // b


def _round_up(x, m):
    return _cdiv(x, m) * m


def _default_num_parallel():
    """2 row-slices on multi-TensorCore chips (v7x), else 1."""
    try:
        kind = jax.devices()[0].device_kind.lower()
    except Exception:
        return 1
    if "v7" in kind or "tpu7" in kind:
        return 2
    return 1


def _bce_sum_kernel(pred_ref, target_ref, out_ref, *, block_rows, lane,
                    chunk_rows, acc_rows, rows, seq_steps, need_mask):
    """Accumulate per-slice partial sums of BCE-with-logits into out_ref."""
    k = pl.program_id(1)  # sequential (reduction) axis

    @pl.when(k == 0)
    def _():
        out_ref[...] = jnp.zeros_like(out_ref)

    # Global row offset of this tile, from the *logical* (unclamped) block
    # index.  The index_map clamps the DMA to the last in-bounds block, so any
    # rows at/after `rows` are garbage and must be zeroed before accumulating.
    row0 = (pl.program_id(0) * seq_steps + k) * block_rows

    if need_mask:
        # Hoisted out of the chunk loop (broadcast_in_dim is not CSE'd).
        sub_iota = jax.lax.broadcasted_iota(jnp.int32, (chunk_rows, 1), 0)

    def one_chunk(start_rows):
        x = pred_ref[pl.ds(start_rows, chunk_rows), :].astype(jnp.float32)
        t = target_ref[pl.ds(start_rows, chunk_rows), :].astype(jnp.float32)
        # Numerically stable BCEWithLogits (matches torch):
        #   max(x, 0) - x*t + log1p(exp(-|x|))
        loss = jnp.maximum(x, 0.0) - x * t + jnp.log1p(jnp.exp(-jnp.abs(x)))
        if need_mask:
            # Mask BEFORE accumulation: OOB tile contents are unspecified.
            valid = (row0 + start_rows + sub_iota) < rows
            loss = jnp.where(valid, loss, 0.0)
        if acc_rows == 8:
            # (chunk_rows, lane) -> (chunk_rows//8, 8, lane): lane stays minor
            # (layout-preserving); reduction over the leading axis is pure
            # vreg adds on the VPU.
            return loss.reshape(chunk_rows // 8, 8, lane).sum(axis=0)
        # Tiny-input path: block_rows == rows < 8, accumulator is full-size.
        return loss

    n_chunks = block_rows // chunk_rows
    if n_chunks == 1:
        out_ref[...] += one_chunk(0)
    else:
        def body(c, acc):
            start = pl.multiple_of(c * chunk_rows, chunk_rows)
            return acc + one_chunk(start)

        out_ref[...] += jax.lax.fori_loop(
            0, n_chunks, body, jnp.zeros((acc_rows, lane), jnp.float32))


def seg_loss_pallas(target, pred, *, num_parallel=None):
    """BCEWithLogitsLoss(reduction='mean') over same-shaped float tensors."""
    assert target.shape == pred.shape
    total = math.prod(pred.shape)
    assert total > 0

    P = _default_num_parallel() if num_parallel is None else int(num_parallel)
    P = max(1, P)

    # ---- pick a lane width that divides `total` (copy-free reshape path) ----
    lane = None
    for cand in (512, 256, 128):
        if total % cand == 0 and (total // cand) % 8 == 0:
            lane = cand
            break
    if lane is None:
        for cand in (512, 256, 128):
            if total % cand == 0:
                lane = cand
                break

    p_flat = pred.reshape(-1)
    t_flat = target.reshape(-1)

    if lane is None:
        # Rare fallback (total not divisible by 128): pad with a finite,
        # dtype-safe sentinel that contributes exactly 0 loss
        # (max(-1e4,0)=0, -(-1e4)*0=0, log1p(exp(-1e4))->0; safe for fp16/bf16).
        # This copies the inputs once; never taken for typical image shapes.
        lane = 512
        pad = _round_up(total, lane) - total
        p_flat = jnp.concatenate(
            [p_flat, jnp.full((pad,), -1e4, dtype=p_flat.dtype)])
        t_flat = jnp.concatenate(
            [t_flat, jnp.zeros((pad,), dtype=t_flat.dtype)])

    rows = p_flat.shape[0] // lane
    p2 = p_flat.reshape(rows, lane)   # free metadata reshape (contiguous)
    t2 = t_flat.reshape(rows, lane)

    # ---- tiling ----
    if rows < 8 * P:
        P = 1  # no point sharding a handful of rows; avoids per-slice waste

    bytes_per_elem = pred.dtype.itemsize + target.dtype.itemsize
    # ~4 MiB per input buffer per step (x2 inputs x2 pipeline buffers = 16 MiB)
    max_block_rows = (4096 if bytes_per_elem <= 4 else 2048) * (512 // lane)

    rows_per_slice = _cdiv(rows, P)
    if rows < 8:
        block_rows = rows                      # block == full array dim
    else:
        block_rows = min(max_block_rows,
                         _round_up(rows_per_slice, 8),
                         (rows // 8) * 8)      # never exceed the array
    K = _cdiv(rows_per_slice, block_rows)      # sequential steps per slice

    # Inner chunking bounds VMEM intermediates / vreg live ranges for big tiles.
    if block_rows > 512 and block_rows % 512 == 0:
        chunk_rows = 512
    else:
        chunk_rows = block_rows
    acc_rows = 8 if block_rows % 8 == 0 else block_rows

    num_data_blocks = _cdiv(rows, block_rows)
    last_block = num_data_blocks - 1
    need_mask = (P * K * block_rows) != rows

    # Clamp logical block index -> last in-bounds block (no-op when exact).
    def idx_map(p, k):
        return (jnp.minimum(p * K + k, last_block), 0)

    kernel = functools.partial(
        _bce_sum_kernel, block_rows=block_rows, lane=lane,
        chunk_rows=chunk_rows, acc_rows=acc_rows, rows=rows,
        seq_steps=K, need_mask=need_mask)

    partial = pl.pallas_call(
        kernel,
        out_shape=jax.ShapeDtypeStruct((P * acc_rows, lane), jnp.float32),
        grid_spec=pltpu.PrefetchScalarGridSpec(
            num_scalar_prefetch=0,
            grid=(P, K),
            in_specs=[
                pl.BlockSpec((block_rows, lane), idx_map),
                pl.BlockSpec((block_rows, lane), idx_map),
            ],
            # Output block constant across k -> resident accumulator per slice.
            out_specs=pl.BlockSpec((acc_rows, lane), lambda p, k: (p, 0)),
        ),
        compiler_params=pltpu.CompilerParams(
            # TODO(synk): on v7x verify via xprof that the leading axis shards
            # across both TensorCores; switch to pltpu.CORE_PARALLEL if not.
            dimension_semantics=("parallel", "arbitrary"),
            vmem_limit_bytes=32 * 1024 * 1024,
        ),
    )(p2, t2)

    # Single final cross-lane/sublane reduce + mean normalization (tiny).
    return jnp.sum(partial) / jnp.float32(total)


def seg_loss_ref(target, pred):
    """Plain-JAX reference matching torch.nn.BCEWithLogitsLoss(reduction='mean')."""
    B = target.shape[0]
    t = target.reshape(B, -1).astype(jnp.float32)
    x = pred.reshape(B, -1).astype(jnp.float32)
    loss = jnp.maximum(x, 0.0) - x * t + jnp.log1p(jnp.exp(-jnp.abs(x)))
    return jnp.mean(loss)


if __name__ == "__main__":
    key = jax.random.PRNGKey(0)
    k1, k2 = jax.random.split(key)
    B, C, H, W = 2, 4, 16, 16
    # pred = raw logits; target = probabilities in [0, 1]
    pred = jax.random.normal(k1, (B, C, H, W), dtype=jnp.float32)
    target = jax.random.uniform(k2, (B, C, H, W), dtype=jnp.float32)

    loss = seg_loss_pallas(target, pred)
    loss = jax.block_until_ready(loss)

    ref = seg_loss_ref(target, pred)
    assert jnp.allclose(loss, ref, rtol=1e-5, atol=1e-6), (loss, ref)
    print("KERNEL_OK")
</pallas_src>

<mosaic_0001>
module attributes {stable_mosaic.version = 11 : i64} {
  func.func @_bce_sum_kernel(%arg0: i32, %arg1: i32, %arg2: memref<8x256xf32, #tpu.memory_space<vmem>>, %arg3: memref<8x256xf32, #tpu.memory_space<vmem>>, %arg4: memref<8x256xf32, #tpu.memory_space<vmem>>) attributes {dimension_semantics = [#tpu.dimension_semantics<parallel>, #tpu.dimension_semantics<arbitrary>], iteration_bounds = array<i64: 1, 1>, scalar_prefetch = 0 : i64, scratch_operands = 0 : i64, tpu.core_type = #tpu.core_type<tc>, window_params = [{transform_indices = @transform_0, window_bounds = array<i64: 8, 256>}, {transform_indices = @transform_1, window_bounds = array<i64: 8, 256>}, {transform_indices = @transform_2, window_bounds = array<i64: 8, 256>}]} {
    %c0_i32 = arith.constant 0 : i32
    %0 = arith.cmpi eq, %arg1, %c0_i32 : i32
    %1 = arith.extui %0 : i1 to i32
    %c0_i32_0 = arith.constant 0 : i32
    %2 = arith.cmpi ne, %1, %c0_i32_0 : i32
    scf.if %2 {
      %cst_10 = arith.constant 0.000000e+00 : f32
      %20 = vector.broadcast %cst_10 : f32 to vector<8x256xf32>
      %c0_11 = arith.constant 0 : index
      %c0_12 = arith.constant 0 : index
      %21 = vector.load %arg4[%c0_11, %c0_12] : memref<8x256xf32, #tpu.memory_space<vmem>>, vector<8x256xf32>
      tpu.vector_store %arg4[%c0_11, %c0_12], %20 {strides = array<i32>} : memref<8x256xf32, #tpu.memory_space<vmem>>, vector<8x256xf32>,
    } else {
    }
    %c0 = arith.constant 0 : index
    %c0_1 = arith.constant 0 : index
    %3 = vector.load %arg4[%c0, %c0_1] : memref<8x256xf32, #tpu.memory_space<vmem>>, vector<8x256xf32>
    %c0_2 = arith.constant 0 : index
    %c0_3 = arith.constant 0 : index
    %4 = vector.load %arg2[%c0_2, %c0_3] : memref<8x256xf32, #tpu.memory_space<vmem>>, vector<8x256xf32>
    %c0_4 = arith.constant 0 : index
    %c0_5 = arith.constant 0 : index
    %5 = vector.load %arg3[%c0_4, %c0_5] : memref<8x256xf32, #tpu.memory_space<vmem>>, vector<8x256xf32>
    %cst = arith.constant 0.000000e+00 : f32
    %6 = vector.broadcast %cst : f32 to vector<8x256xf32>
    %7 = arith.maximumf %4, %6 : vector<8x256xf32>
    %8 = arith.mulf %4, %5 : vector<8x256xf32>
    %9 = arith.subf %7, %8 : vector<8x256xf32>
    %10 = math.absf %4 : vector<8x256xf32>
    %cst_6 = arith.constant 0.000000e+00 : f32
    %11 = vector.broadcast %cst_6 : f32 to vector<8x256xf32>
    %12 = arith.subf %11, %10 : vector<8x256xf32>
    %13 = math.exp %12 : vector<8x256xf32>
    %14 = math.log1p %13 : vector<8x256xf32>
    %15 = arith.addf %9, %14 : vector<8x256xf32>
    %16 = vector.shape_cast %15 : vector<8x256xf32> to vector<1x8x256xf32>
    %cst_7 = arith.constant dense<0.000000e+00> : vector<8x256xf32>
    %17 = vector.multi_reduction <add>, %16, %cst_7 [0] : vector<1x8x256xf32> to vector<8x256xf32>
    %18 = arith.addf %3, %17 : vector<8x256xf32>
    %c0_8 = arith.constant 0 : index
    %c0_9 = arith.constant 0 : index
    %19 = vector.load %arg4[%c0_8, %c0_9] : memref<8x256xf32, #tpu.memory_space<vmem>>, vector<8x256xf32>
    tpu.vector_store %arg4[%c0_8, %c0_9], %18 {strides = array<i32>} : memref<8x256xf32, #tpu.memory_space<vmem>>, vector<8x256xf32>,
    return
  }
  func.func @transform_0(%arg0: i32, %arg1: i32) -> (i32, i32) {
    %c1_i32 = arith.constant 1 : i32
    %0 = arith.muli %arg0, %c1_i32 : i32
    %1 = arith.addi %0, %arg1 : i32
    %c0_i32 = arith.constant 0 : i32
    %2 = arith.minsi %1, %c0_i32 : i32
    %c0_i32_0 = arith.constant 0 : i32
    %c0_i32_1 = arith.constant 0 : i32
    return %2, %c0_i32_0 : i32, i32
  }
  func.func @transform_1(%arg0: i32, %arg1: i32) -> (i32, i32) {
    %c1_i32 = arith.constant 1 : i32
    %0 = arith.muli %arg0, %c1_i32 : i32
    %1 = arith.addi %0, %arg1 : i32
    %c0_i32 = arith.constant 0 : i32
    %2 = arith.minsi %1, %c0_i32 : i32
    %c0_i32_0 = arith.constant 0 : i32
    %c0_i32_1 = arith.constant 0 : i32
    return %2, %c0_i32_0 : i32, i32
  }
  func.func @transform_2(%arg0: i32, %arg1: i32) -> (i32, i32) {
    %c0_i32 = arith.constant 0 : i32
    %c0_i32_0 = arith.constant 0 : i32
    return %arg0, %c0_i32 : i32, i32
  }
}

</mosaic_0001>

<bundles_post_ra>
// kernel: tpu_custom_call.1
= control target key start
LH: loop header
LB: loop body
LE: loop exit
PB: predicated region body
PF: predicated region fallthrough
CT: control target
= control target key end

     0   :  { %7 = vsyncpa [#allocation3], 0  ;;  %s249_s0 = inlined_call_operand.hbm [shape: f32[8,256], index: 0, kind: input, shape index: {}]   ;;  %s250_s1 = inlined_call_operand.hbm [shape: f32[8,256], index: 1, kind: input, shape index: {}]   ;;  %s251_s2 = inlined_call_operand.hbm [shape: f32[8,256], index: 2, kind: output, shape index: {}]  }
   0x1   :  { %8 = vsyncpa [#allocation6], 0 }
   0x2   :  { %9 = vsyncpa [#allocation4], 0  ;;  %s21_s11 = sshll.u32 %s249_s0, 4  ;;  %s222_s12 = smov [#allocation2]   ;;  %s22_s11 = int_to_ptr.hbm [resolvable:$true] %s21_s11 }
   0x3   :  { %s23_s13 = sshll.u32 %s222_s12, 4  ;;  %s38_s16 = sshll.u32 %s250_s1, 4  ;;  %s24_s13 = int_to_ptr.vmem [resolvable:$true] %s23_s13  ;;  %s39_s16 = int_to_ptr.hbm [resolvable:$true] %s38_s16 }
   0x4   :  { %26 = dma.hbm_to_vmem [thread:$0]  %s22_s11, 256, %s24_s13, [#allocation3]  }
   0x5   :  { %s223_s17 = smov [#allocation5]  }
   0x6   :  { %s40_s18 = sshll.u32 %s223_s17, 4  ;;  %s41_s18 = int_to_ptr.vmem [resolvable:$true] %s40_s18 }
   0x7   :  { %43 = dma.hbm_to_vmem [thread:$0]  %s39_s16, 256, %s41_s18, [#allocation6]  }
   0x8   :  { %216 = dma.done.wait [#allocation3], 256  }
   0x9   :  { %217 = vsyncadd [#allocation3], 4294967040 }
   0xa   :  { %218 = dma.done.wait [#allocation6], 256  }
   0xb   :  { %219 = vsyncadd [#allocation6], 4294967040  ;;  %v66_v0 = vld [vmem:[#allocation2] sm:$0xff]  ;;  %v67_v1 = vld [vmem:[#allocation2 + $0x8] sm:$0xff]  ;;  %s224_s0 = smov [#allocation7]   ;;  %s117_s21 = sshll.u32 %s251_s2, 4  ;;  %s118_s21 = int_to_ptr.hbm [resolvable:$true] %s117_s21 }
   0xc   :  { %v76_v2 = vand.u32 2147483647, %v66_v0  ;;  %v77_v3 = vand.u32 2147483647, %v67_v1  ;;  %v68_v12 = vld [vmem:[#allocation5] sm:$0xff]  ;;  %v69_v15 = vld [vmem:[#allocation5 + $0x8] sm:$0xff] }
   0xd   :  { %v70_v17 = vmax.f32 %v66_v0, 0.0  ;;  %v72_v18 = vmul.f32 %v68_v12, %v66_v0  ;;  %v71_v21 = vmax.f32 %v67_v1, 0.0  ;;  %v73_v22 = vmul.f32 %v69_v15, %v67_v1  ;;  %s115_s1 = sshll.u32 %s224_s0, 4  ;;  %s116_s1 = int_to_ptr.vmem [resolvable:$true] %s115_s1 }
   0xe   :  { %v78_v4 = vsub.f32 0.0, %v76_v2  ;;  %v79_v5 = vsub.f32 0.0, %v77_v3 }
   0xf   :  { %v74_v26 = vsub.f32 %v70_v17, %v72_v18  ;;  %v75_v30 = vsub.f32 %v71_v21, %v73_v22 }
  0x10   :  { %v80_v6 = vmul.f32 1.442695, %v78_v4  ;;  %v82_v7 = vmul.f32 1.442695, %v79_v5 }
  0x12   :  { %136 = vpow2.f32 %v80_v6 }
  0x13   :  { %138 = vpow2.f32 %v82_v7 }
  0x18   :  { %v137_v8 = vpop.eup %136 }
  0x19   :  { %v139_v9 = vpop.eup %138  ;;  %v84_v10 = vadd.f32 1.0, %v137_v8  ;;  %v87_v11 = vmul.f32 -0.5, %v137_v8  ;;  %v90_v19 = vand.u32 2147483647, %v137_v8 }
  0x1a   :  { %v93_v13 = vadd.f32 1.0, %v139_v9  ;;  %v96_v14 = vmul.f32 -0.5, %v139_v9  ;;  %v99_v23 = vand.u32 2147483647, %v139_v9 }
  0x1b   :  { %140 = vlog2.f32 %v84_v10  ;;  %v88_v16 = vadd.f32 1.0, %v87_v11  ;;  %vm91_vm0 = vcmp.lt.f32.partialorder %v90_v19, 0.0004427343 }
  0x1c   :  { %142 = vlog2.f32 %v93_v13  ;;  %v97_v20 = vadd.f32 1.0, %v96_v14  ;;  %vm100_vm1 = vcmp.lt.f32.partialorder %v99_v23, 0.0004427343 }
  0x1d   :  { %v89_v24 = vmul.f32 %v137_v8, %v88_v16 }
  0x1e   :  { %v98_v27 = vmul.f32 %v139_v9, %v97_v20 }
  0x21   :  { %v141_v25 = vpop.eup %140 }
  0x22   :  { %v143_v28 = vpop.eup %142  ;;  %v86_v29 = vmul.f32 0.6931472, %v141_v25 }
  0x23   :  { %v95_v31 = vmul.f32 0.6931472, %v143_v28 }
  0x24   :  { %v92_v32 = vsel %vm91_vm0, %v89_v24, %v86_v29 }
  0x25   :  { %v102_v33 = vadd.f32 %v92_v32, %v74_v26  ;;  %v101_v34 = vsel %vm100_vm1, %v98_v27, %v95_v31 }
  0x26   :  { %v103_v35 = vadd.f32 %v101_v34, %v75_v30 }
  0x27   :  { %108 = vst [vmem:[#allocation7] sm:$0xff] %v102_v33 }
  0x28   :  { %109 = vst [vmem:[#allocation7 + $0x8] sm:$0xff] %v103_v35 }
  0x29   :  { %120 = dma.vmem_to_hbm [thread:$0]  %s116_s1, 256, %s118_s21, [#allocation4]  }
  0x2a   :  { %220 = dma.done.wait [#allocation4], 256  }
  0x2b   :  { %221 = vsyncadd [#allocation4], 4294967040 }
  0x2c   :  { %125 = vsyncpa [#allocation3], 1 }
  0x2d   :  { %126 = vsyncpa [#allocation6], 1 }
  0x2e   :  { %127 = vsyncpa [#allocation4], 1 }

</bundles_post_ra>
